<compile_context>
chip_gen: v7x
topology: tpu7x:2x2x1
jax: 0.10.0
libtpu: 0.0.40
codegen_flags: <defaults>
</compile_context>

<pallas_src>
import functools

import jax
import jax.numpy as jnp
from jax.experimental import pallas as pl
from jax.experimental.pallas import tpu as pltpu


# ----------------------------------------------------------------------------
# Tiling helper: largest P-tile (multiple of 128) that divides P, else full P.
# ----------------------------------------------------------------------------
def _choose_p_tile(P):
    for tp in (2048, 1024, 512, 256, 128):
        if P % tp == 0:
            return tp
    return P


# ----------------------------------------------------------------------------
# Kernel 1: analytic data-consistency gradient (elementwise, tiled over N and P)
# ----------------------------------------------------------------------------
def _grad_kernel(eta_ref, scal_ref, tes_ref, ksp_ref, sense_ref, msub_ref,
                 mbrain_ref, grad_ref):
    # Blocks: eta [1, Ce, TP] f32, ksp [1, C, T, TP] bf16, sense [1, C, TP] bf16,
    #         msub [1, T, TP] bf16, mbrain [1, 1, TP] bf16, grad [1, Ce, TP] f32.
    eta = eta_ref[0].astype(jnp.float32)           # [Ce, TP]
    scale = scal_ref[...].astype(jnp.float32)      # [Ce, 1]
    eta_s = eta * scale                            # eta_k * scaling[0]
    m0 = eta_s[0:1, :]                             # [1, TP]
    r2 = eta_s[1:2, :]                             # [1, TP]

    tes = tes_ref[...].astype(jnp.float32)         # [T, 1]
    e_decay = jnp.exp(-tes * r2)                   # [T, TP]
    signal = m0 * e_decay                          # [T, TP]

    msub = msub_ref[0].astype(jnp.float32)         # [T, TP]
    sense = sense_ref[0].astype(jnp.float32)       # [C, TP]
    ksp = ksp_ref[0].astype(jnp.float32)           # [C, T, TP]

    # Vectorized over coils: residual and coil-sum in one pass.
    resid = msub[None, :, :] * (sense[:, None, :] * signal[None, :, :] - ksp)
    w = jnp.sum(resid * sense[:, None, :], axis=0)           # [T, TP]

    mbrain = mbrain_ref[0].astype(jnp.float32)     # [1, TP]
    g_m0 = jnp.sum(w * e_decay, axis=0, keepdims=True) * mbrain * 0.01
    g_r2 = jnp.sum(w * (m0 * (-tes)) * e_decay, axis=0, keepdims=True) * mbrain * 0.01
    g_m0 = jnp.where(g_m0 != g_m0, 0.0, g_m0)      # NaN -> 0
    g_r2 = jnp.where(g_r2 != g_r2, 0.0, g_r2)

    # Direct row stores (no concat / relayout of a [2, TP] tile).
    grad_ref[0, 0:1, :] = g_m0.astype(grad_ref.dtype)
    grad_ref[0, 1:2, :] = g_r2.astype(grad_ref.dtype)


def grad_pallas(eta_flat, scaling_ce1, tes_t1, ksp_flat, sense_flat, msub_flat,
                mbrain_flat):
    N, Ce, P = eta_flat.shape
    C = sense_flat.shape[1]
    T = tes_t1.shape[0]
    TP = _choose_p_tile(P)
    return pl.pallas_call(
        _grad_kernel,
        out_shape=jax.ShapeDtypeStruct((N, Ce, P), jnp.float32),
        grid_spec=pltpu.PrefetchScalarGridSpec(
            num_scalar_prefetch=0,
            grid=(N, P // TP),
            in_specs=[
                pl.BlockSpec((1, Ce, TP), lambda b, p: (b, 0, p)),
                pl.BlockSpec((Ce, 1), lambda b, p: (0, 0)),
                pl.BlockSpec((T, 1), lambda b, p: (0, 0)),
                pl.BlockSpec((1, C, T, TP), lambda b, p: (b, 0, 0, p)),
                pl.BlockSpec((1, C, TP), lambda b, p: (b, 0, p)),
                pl.BlockSpec((1, T, TP), lambda b, p: (b, 0, p)),
                pl.BlockSpec((1, 1, TP), lambda b, p: (b, 0, p)),
            ],
            out_specs=pl.BlockSpec((1, Ce, TP), lambda b, p: (b, 0, p)),
        ),
        compiler_params=pltpu.CompilerParams(
            dimension_semantics=("parallel", "parallel")),
    )(eta_flat, scaling_ce1, tes_t1, ksp_flat, sense_flat, msub_flat, mbrain_flat)


# ----------------------------------------------------------------------------
# Kernel 2: ConvRNN step with in-kernel 3x3 shifts (masked lane rolls) + MXU
# matmuls in bf16 (f32 accumulation) and lane-dense [C, P] outputs.
# ----------------------------------------------------------------------------
def _rnn_step_kernel(xh_ref, eta_ref, wall_ref, bh_ref, wout_ref, bo_ref,
                     eta_out_ref, h_out_ref, *, H, W):
    P = H * W
    Ch = wall_ref.shape[1]
    Ce = eta_ref.shape[1]

    xh = xh_ref[0].astype(jnp.float32)             # [Ctot, P] (Ctot = 2*Ce + Ch)

    # Flat-position row/col indices for boundary masking of the 3x3 taps.
    pidx = jax.lax.broadcasted_iota(jnp.int32, (1, P), 1)
    row = pidx // W
    col = pidx - row * W

    pre = jnp.zeros((Ch, P), jnp.float32)
    t = 0
    for dy in (-1, 0, 1):
        for dx in (-1, 0, 1):
            s = dy * W + dx
            if s == 0:
                shifted = xh
            else:
                # shifted[:, p] = xh[:, p + s]  (lane rotate, static shift)
                shifted = pltpu.roll(xh, shift=(-s) % P, axis=1)
            valid = ((row + dy >= 0) & (row + dy < H) &
                     (col + dx >= 0) & (col + dx < W))        # zero-pad boundary
            shifted = jnp.where(valid, shifted, 0.0)
            pre = pre + jnp.dot(wall_ref[t],                   # [Ch, Ctot] bf16
                                shifted.astype(jnp.bfloat16),  # [Ctot, P] bf16
                                preferred_element_type=jnp.float32)
            t += 1

    h_new = jnp.tanh(pre + bh_ref[...].astype(jnp.float32))    # [Ch, P] f32
    delta = jnp.dot(wout_ref[...],                             # [Ce, Ch] bf16
                    h_new.astype(jnp.bfloat16),
                    preferred_element_type=jnp.float32)        # [Ce, P]
    eta_new = eta_ref[0].astype(jnp.float32) + delta + bo_ref[...].astype(jnp.float32)

    # eta[:, 0][eta[:, 0] < 0] = 0   (clamp channel 0)
    ch_idx = jax.lax.broadcasted_iota(jnp.int32, (Ce, P), 0)
    eta_new = jnp.where(ch_idx == 0, jnp.maximum(eta_new, 0.0), eta_new)

    eta_out_ref[0] = eta_new.astype(eta_out_ref.dtype)         # lane-dense [Ce, P]
    h_out_ref[0] = h_new.astype(h_out_ref.dtype)               # lane-dense [Ch, P]


def rnn_step_pallas(xh, eta_flat, w_all, b_h, w_out, b_o, *, H, W):
    N, Ctot, P = xh.shape
    Ce = eta_flat.shape[1]
    Ch = w_all.shape[1]
    assert w_all.shape == (9, Ch, Ctot)
    return pl.pallas_call(
        functools.partial(_rnn_step_kernel, H=H, W=W),
        out_shape=(jax.ShapeDtypeStruct((N, Ce, P), jnp.float32),
                   jax.ShapeDtypeStruct((N, Ch, P), jnp.float32)),
        grid_spec=pltpu.PrefetchScalarGridSpec(
            num_scalar_prefetch=0,
            grid=(N,),
            in_specs=[
                pl.BlockSpec((1, Ctot, P), lambda b: (b, 0, 0)),
                pl.BlockSpec((1, Ce, P), lambda b: (b, 0, 0)),
                pl.BlockSpec((9, Ch, Ctot), lambda b: (0, 0, 0)),
                pl.BlockSpec((Ch, 1), lambda b: (0, 0)),
                pl.BlockSpec((Ce, Ch), lambda b: (0, 0)),
                pl.BlockSpec((Ce, 1), lambda b: (0, 0)),
            ],
            out_specs=[
                pl.BlockSpec((1, Ce, P), lambda b: (b, 0, 0)),
                pl.BlockSpec((1, Ch, P), lambda b: (b, 0, 0)),
            ],
        ),
        compiler_params=pltpu.CompilerParams(dimension_semantics=("parallel",)),
    )(xh, eta_flat, w_all, b_h, w_out, b_o)


# ----------------------------------------------------------------------------
# Parameters for the synthetic ConvRNN stand-in.
# ----------------------------------------------------------------------------
def init_rnn_params(key, c_eta, c_hid):
    c_in = 2 * c_eta + c_hid                      # [eta, grad, h] channels, fused
    k = jax.random.split(key, 4)
    return dict(
        w_all=(0.05 * jax.random.normal(k[0], (9, c_hid, c_in), jnp.float32)
               ).astype(jnp.bfloat16),            # one weight per 3x3 tap
        b_h=0.05 * jax.random.normal(k[1], (c_hid, 1), jnp.float32),
        w_out=(0.05 * jax.random.normal(k[2], (c_eta, c_hid), jnp.float32)
               ).astype(jnp.bfloat16),
        b_o=0.05 * jax.random.normal(k[3], (c_eta, 1), jnp.float32),
    )


# ----------------------------------------------------------------------------
# JAX glue (layout plumbing only; persistent lane-dense [N, C, P] layout).
# ----------------------------------------------------------------------------
def rim_forward(params, eta, scaling, data, hx=None, n_steps=1,
                accumulate_eta=False):
    """Mirrors RIM.forward. eta: [N, Ce, H, W] (NCHW), returns (etas, hx)."""
    N, Ce, H, W = eta.shape
    assert Ce == 2, "synthetic grad stand-in models 2 parameters (M0, R2*)"
    P = H * W
    # data = (y, y_ksp, mask_subsampling, mask_brain, TEs, sense); data[0] unused
    # (exactly as in the torch forward).
    _, y_ksp, mask_sub, mask_brain, tes, sense = data
    C, T = sense.shape[1], tes.shape[0]
    Ch = params["w_all"].shape[1]

    scaling_ce1 = scaling[0].reshape(Ce, 1).astype(jnp.float32)
    tes_t1 = tes.reshape(T, 1).astype(jnp.float32)
    # Heavy, HBM-bandwidth-dominant inputs stored in bf16 (masks are 0/1 exact).
    ksp_flat = y_ksp.reshape(N, C, T, P).astype(jnp.bfloat16)
    sense_flat = sense.reshape(N, C, P).astype(jnp.bfloat16)
    msub_flat = mask_sub.reshape(N, T, P).astype(jnp.bfloat16)
    mbrain_flat = mask_brain.reshape(N, 1, P).astype(jnp.bfloat16)

    eta_flat = eta.reshape(N, Ce, P).astype(jnp.float32)       # free reshape
    if hx is None:
        hx_flat = jnp.zeros((N, Ch, P), jnp.float32)
    else:
        hx_flat = hx.reshape(N, Ch, P).astype(jnp.float32)

    etas = []
    for _ in range(n_steps):
        grad_flat = grad_pallas(eta_flat, scaling_ce1, tes_t1, ksp_flat,
                                sense_flat, msub_flat, mbrain_flat)  # [N, Ce, P]
        # Fused ConvRNN input: [eta, grad, h] along channels (no HBM im2col).
        xh = jnp.concatenate([eta_flat, grad_flat, hx_flat], axis=1)  # [N, Ctot, P]
        eta_flat, hx_flat = rnn_step_pallas(
            xh, eta_flat, params["w_all"], params["b_h"], params["w_out"],
            params["b_o"], H=H, W=W)
        if accumulate_eta:
            etas.append(eta_flat.reshape(N, Ce, H, W))

    if accumulate_eta:
        out = etas
    else:
        out = eta_flat.reshape(N, Ce, H, W)
    return out, hx_flat.reshape(N, Ch, H, W)


if __name__ == "__main__":
    key = jax.random.PRNGKey(0)
    ks = jax.random.split(key, 8)

    N, Ce, H, W = 2, 2, 16, 16       # batch, eta features (M0, R2*), spatial
    NCOIL, T, CH = 4, 4, 32          # coils, echo times, RNN hidden channels

    eta = jax.random.uniform(ks[0], (N, Ce, H, W), jnp.float32, 0.1, 1.0)
    scaling = jnp.ones((1, Ce, 1, 1), jnp.float32)

    y = jax.random.normal(ks[1], (N, NCOIL, T, H, W), jnp.float32)  # unused (as in torch forward)
    y_ksp = 0.5 * jax.random.normal(ks[2], (N, NCOIL, T, H, W), jnp.float32)
    mask_sub = (jax.random.uniform(ks[3], (N, T, H, W)) > 0.5).astype(jnp.float32)
    mask_brain = (jax.random.uniform(ks[4], (N, H, W)) > 0.2).astype(jnp.float32)
    tes = jnp.linspace(0.005, 0.04, T).astype(jnp.float32)
    sense = 0.5 + 0.5 * jax.random.uniform(ks[5], (N, NCOIL, H, W), jnp.float32)
    data = (y, y_ksp, mask_sub, mask_brain, tes, sense)

    params = init_rnn_params(ks[6], Ce, CH)

    etas, hx = rim_forward(params, eta, scaling, data, hx=None, n_steps=2,
                           accumulate_eta=False)
    jax.block_until_ready(etas)
    jax.block_until_ready(hx)
    assert etas.shape == (N, Ce, H, W) and hx.shape == (N, CH, H, W)
    assert bool(jnp.all(jnp.isfinite(etas))) and bool(jnp.all(jnp.isfinite(hx)))
    print("KERNEL_OK")
</pallas_src>

<mosaic_0001>
module attributes {stable_mosaic.version = 11 : i64} {
  func.func @_grad_kernel(%arg0: i32, %arg1: i32, %arg2: memref<1x2x256xf32, #tpu.memory_space<vmem>>, %arg3: memref<2x1xf32, #tpu.memory_space<vmem>>, %arg4: memref<4x1xf32, #tpu.memory_space<vmem>>, %arg5: memref<1x4x4x256xbf16, #tpu.memory_space<vmem>>, %arg6: memref<1x4x256xbf16, #tpu.memory_space<vmem>>, %arg7: memref<1x4x256xbf16, #tpu.memory_space<vmem>>, %arg8: memref<1x1x256xbf16, #tpu.memory_space<vmem>>, %arg9: memref<1x2x256xf32, #tpu.memory_space<vmem>>) attributes {dimension_semantics = [#tpu.dimension_semantics<parallel>, #tpu.dimension_semantics<parallel>], iteration_bounds = array<i64: 2, 1>, scalar_prefetch = 0 : i64, scratch_operands = 0 : i64, tpu.core_type = #tpu.core_type<tc>, window_params = [{transform_indices = @transform_0, window_bounds = array<i64: 1, 2, 256>}, {pipeline_mode = #tpu.pipeline_mode<synchronous>, transform_indices = @transform_1, window_bounds = array<i64: 2, 1>}, {pipeline_mode = #tpu.pipeline_mode<synchronous>, transform_indices = @transform_2, window_bounds = array<i64: 4, 1>}, {transform_indices = @transform_3, window_bounds = array<i64: 1, 4, 4, 256>}, {transform_indices = @transform_4, window_bounds = array<i64: 1, 4, 256>}, {transform_indices = @transform_5, window_bounds = array<i64: 1, 4, 256>}, {transform_indices = @transform_6, window_bounds = array<i64: 1, 1, 256>}, {transform_indices = @transform_7, window_bounds = array<i64: 1, 2, 256>}]} {
    %c0 = arith.constant 0 : index
    %c0_0 = arith.constant 0 : index
    %c0_1 = arith.constant 0 : index
    %0 = vector.load %arg2[%c0, %c0_0, %c0_1] : memref<1x2x256xf32, #tpu.memory_space<vmem>>, vector<1x2x256xf32>
    %1 = vector.shape_cast %0 : vector<1x2x256xf32> to vector<2x256xf32>
    %c0_2 = arith.constant 0 : index
    %c0_3 = arith.constant 0 : index
    %2 = vector.load %arg3[%c0_2, %c0_3] : memref<2x1xf32, #tpu.memory_space<vmem>>, vector<2x1xf32>
    %3 = vector.broadcast %2 : vector<2x1xf32> to vector<2x256xf32>
    %4 = arith.mulf %1, %3 : vector<2x256xf32>
    %5 = vector.extract_strided_slice %4 {offsets = [0, 0], sizes = [1, 256], strides = [1, 1]} : vector<2x256xf32> to vector<1x256xf32>
    %6 = vector.extract_strided_slice %4 {offsets = [1, 0], sizes = [1, 256], strides = [1, 1]} : vector<2x256xf32> to vector<1x256xf32>
    %c0_4 = arith.constant 0 : index
    %c0_5 = arith.constant 0 : index
    %7 = vector.load %arg4[%c0_4, %c0_5] : memref<4x1xf32, #tpu.memory_space<vmem>>, vector<4x1xf32>
    %cst = arith.constant 0.000000e+00 : f32
    %8 = vector.broadcast %cst : f32 to vector<4x1xf32>
    %9 = arith.subf %8, %7 : vector<4x1xf32>
    %10 = vector.broadcast %9 : vector<4x1xf32> to vector<4x256xf32>
    %11 = vector.broadcast %6 : vector<1x256xf32> to vector<4x256xf32>
    %12 = arith.mulf %10, %11 : vector<4x256xf32>
    %13 = math.exp %12 : vector<4x256xf32>
    %14 = vector.broadcast %5 : vector<1x256xf32> to vector<4x256xf32>
    %15 = arith.mulf %14, %13 : vector<4x256xf32>
    %c0_6 = arith.constant 0 : index
    %c0_7 = arith.constant 0 : index
    %c0_8 = arith.constant 0 : index
    %16 = vector.load %arg7[%c0_6, %c0_7, %c0_8] : memref<1x4x256xbf16, #tpu.memory_space<vmem>>, vector<1x4x256xbf16>
    %17 = vector.shape_cast %16 : vector<1x4x256xbf16> to vector<4x256xbf16>
    %18 = arith.extf %17 : vector<4x256xbf16> to vector<4x256xf32>
    %c0_9 = arith.constant 0 : index
    %c0_10 = arith.constant 0 : index
    %c0_11 = arith.constant 0 : index
    %19 = vector.load %arg6[%c0_9, %c0_10, %c0_11] : memref<1x4x256xbf16, #tpu.memory_space<vmem>>, vector<1x4x256xbf16>
    %20 = vector.shape_cast %19 : vector<1x4x256xbf16> to vector<4x256xbf16>
    %21 = arith.extf %20 : vector<4x256xbf16> to vector<4x256xf32>
    %c0_12 = arith.constant 0 : index
    %c0_13 = arith.constant 0 : index
    %c0_14 = arith.constant 0 : index
    %c0_15 = arith.constant 0 : index
    %22 = vector.load %arg5[%c0_12, %c0_13, %c0_14, %c0_15] : memref<1x4x4x256xbf16, #tpu.memory_space<vmem>>, vector<1x4x4x256xbf16>
    %23 = vector.shape_cast %22 : vector<1x4x4x256xbf16> to vector<4x4x256xbf16>
    %24 = arith.extf %23 : vector<4x4x256xbf16> to vector<4x4x256xf32>
    %25 = vector.shape_cast %18 : vector<4x256xf32> to vector<1x4x256xf32>
    %26 = vector.shape_cast %21 : vector<4x256xf32> to vector<4x1x256xf32>
    %27 = vector.shape_cast %15 : vector<4x256xf32> to vector<1x4x256xf32>
    %28 = vector.broadcast %26 : vector<4x1x256xf32> to vector<4x4x256xf32>
    %29 = vector.broadcast %27 : vector<1x4x256xf32> to vector<4x4x256xf32>
    %30 = arith.mulf %28, %29 : vector<4x4x256xf32>
    %31 = arith.subf %30, %24 : vector<4x4x256xf32>
    %32 = vector.broadcast %25 : vector<1x4x256xf32> to vector<4x4x256xf32>
    %33 = arith.mulf %32, %31 : vector<4x4x256xf32>
    %34 = vector.shape_cast %21 : vector<4x256xf32> to vector<4x1x256xf32>
    %35 = vector.broadcast %34 : vector<4x1x256xf32> to vector<4x4x256xf32>
    %36 = arith.mulf %33, %35 : vector<4x4x256xf32>
    %cst_16 = arith.constant dense<0.000000e+00> : vector<4x256xf32>
    %37 = vector.multi_reduction <add>, %36, %cst_16 [0] : vector<4x4x256xf32> to vector<4x256xf32>
    %c0_17 = arith.constant 0 : index
    %c0_18 = arith.constant 0 : index
    %c0_19 = arith.constant 0 : index
    %38 = vector.load %arg8[%c0_17, %c0_18, %c0_19] : memref<1x1x256xbf16, #tpu.memory_space<vmem>>, vector<1x1x256xbf16>
    %39 = vector.shape_cast %38 : vector<1x1x256xbf16> to vector<1x256xbf16>
    %40 = arith.extf %39 : vector<1x256xbf16> to vector<1x256xf32>
    %41 = arith.mulf %37, %13 : vector<4x256xf32>
    %cst_20 = arith.constant dense<0.000000e+00> : vector<256xf32>
    %42 = vector.multi_reduction <add>, %41, %cst_20 [0] : vector<4x256xf32> to vector<256xf32>
    %43 = vector.shape_cast %42 : vector<256xf32> to vector<1x256xf32>
    %44 = arith.mulf %43, %40 : vector<1x256xf32>
    %cst_21 = arith.constant 0.00999999977 : f32
    %45 = vector.broadcast %cst_21 : f32 to vector<1x256xf32>
    %46 = arith.mulf %44, %45 : vector<1x256xf32>
    %cst_22 = arith.constant 0.000000e+00 : f32
    %47 = vector.broadcast %cst_22 : f32 to vector<4x1xf32>
    %48 = arith.subf %47, %7 : vector<4x1xf32>
    %49 = vector.broadcast %5 : vector<1x256xf32> to vector<4x256xf32>
    %50 = vector.broadcast %48 : vector<4x1xf32> to vector<4x256xf32>
    %51 = arith.mulf %49, %50 : vector<4x256xf32>
    %52 = arith.mulf %37, %51 : vector<4x256xf32>
    %53 = arith.mulf %52, %13 : vector<4x256xf32>
    %cst_23 = arith.constant dense<0.000000e+00> : vector<256xf32>
    %54 = vector.multi_reduction <add>, %53, %cst_23 [0] : vector<4x256xf32> to vector<256xf32>
    %55 = vector.shape_cast %54 : vector<256xf32> to vector<1x256xf32>
    %56 = arith.mulf %55, %40 : vector<1x256xf32>
    %cst_24 = arith.constant 0.00999999977 : f32
    %57 = vector.broadcast %cst_24 : f32 to vector<1x256xf32>
    %58 = arith.mulf %56, %57 : vector<1x256xf32>
    %59 = arith.cmpf one, %46, %46 : vector<1x256xf32>
    %cst_25 = arith.constant 0.000000e+00 : f32
    %60 = vector.broadcast %cst_25 : f32 to vector<1x256xf32>
    %61 = arith.select %59, %60, %46 : vector<1x256xi1>, vector<1x256xf32>
    %62 = arith.cmpf one, %58, %58 : vector<1x256xf32>
    %cst_26 = arith.constant 0.000000e+00 : f32
    %63 = vector.broadcast %cst_26 : f32 to vector<1x256xf32>
    %64 = arith.select %62, %63, %58 : vector<1x256xi1>, vector<1x256xf32>
    %c0_27 = arith.constant 0 : index
    %c0_28 = arith.constant 0 : index
    %c0_29 = arith.constant 0 : index
    %65 = vector.load %arg9[%c0_27, %c0_28, %c0_29] : memref<1x2x256xf32, #tpu.memory_space<vmem>>, vector<1x1x256xf32>
    %66 = vector.shape_cast %65 : vector<1x1x256xf32> to vector<1x256xf32>
    %67 = vector.shape_cast %61 : vector<1x256xf32> to vector<1x1x256xf32>
    tpu.vector_store %arg9[%c0_27, %c0_28, %c0_29], %67 {strides = array<i32>} : memref<1x2x256xf32, #tpu.memory_space<vmem>>, vector<1x1x256xf32>,
    %c0_30 = arith.constant 0 : index
    %c1 = arith.constant 1 : index
    %c0_31 = arith.constant 0 : index
    %68 = vector.load %arg9[%c0_30, %c1, %c0_31] : memref<1x2x256xf32, #tpu.memory_space<vmem>>, vector<1x1x256xf32>
    %69 = vector.shape_cast %68 : vector<1x1x256xf32> to vector<1x256xf32>
    %70 = vector.shape_cast %64 : vector<1x256xf32> to vector<1x1x256xf32>
    tpu.vector_store %arg9[%c0_30, %c1, %c0_31], %70 {strides = array<i32>} : memref<1x2x256xf32, #tpu.memory_space<vmem>>, vector<1x1x256xf32>,
    return
  }
  func.func @transform_0(%arg0: i32, %arg1: i32) -> (i32, i32, i32) {
    %c0_i32 = arith.constant 0 : i32
    %c0_i32_0 = arith.constant 0 : i32
    return %arg0, %c0_i32, %arg1 : i32, i32, i32
  }
  func.func @transform_1(%arg0: i32, %arg1: i32) -> (i32, i32) {
    %c0_i32 = arith.constant 0 : i32
    %c0_i32_0 = arith.constant 0 : i32
    %c0_i32_1 = arith.constant 0 : i32
    return %c0_i32, %c0_i32_0 : i32, i32
  }
  func.func @transform_2(%arg0: i32, %arg1: i32) -> (i32, i32) {
    %c0_i32 = arith.constant 0 : i32
    %c0_i32_0 = arith.constant 0 : i32
    %c0_i32_1 = arith.constant 0 : i32
    return %c0_i32, %c0_i32_0 : i32, i32
  }
  func.func @transform_3(%arg0: i32, %arg1: i32) -> (i32, i32, i32, i32) {
    %c0_i32 = arith.constant 0 : i32
    %c0_i32_0 = arith.constant 0 : i32
    %c0_i32_1 = arith.constant 0 : i32
    return %arg0, %c0_i32, %c0_i32_0, %arg1 : i32, i32, i32, i32
  }
  func.func @transform_4(%arg0: i32, %arg1: i32) -> (i32, i32, i32) {
    %c0_i32 = arith.constant 0 : i32
    %c0_i32_0 = arith.constant 0 : i32
    return %arg0, %c0_i32, %arg1 : i32, i32, i32
  }
  func.func @transform_5(%arg0: i32, %arg1: i32) -> (i32, i32, i32) {
    %c0_i32 = arith.constant 0 : i32
    %c0_i32_0 = arith.constant 0 : i32
    return %arg0, %c0_i32, %arg1 : i32, i32, i32
  }
  func.func @transform_6(%arg0: i32, %arg1: i32) -> (i32, i32, i32) {
    %c0_i32 = arith.constant 0 : i32
    %c0_i32_0 = arith.constant 0 : i32
    return %arg0, %c0_i32, %arg1 : i32, i32, i32
  }
  func.func @transform_7(%arg0: i32, %arg1: i32) -> (i32, i32, i32) {
    %c0_i32 = arith.constant 0 : i32
    %c0_i32_0 = arith.constant 0 : i32
    return %arg0, %c0_i32, %arg1 : i32, i32, i32
  }
}

</mosaic_0001>

<bundles_post_ra>
// kernel: tpu_custom_call.1
= control target key start
LH: loop header
LB: loop body
LE: loop exit
PB: predicated region body
PF: predicated region fallthrough
CT: control target
= control target key end

     0   :  { %12 = vsyncpa [#allocation3], 0  ;;  %s1509_s0 = inlined_call_operand.vmem [shape: f32[2,2,256], index: 0, kind: input, shape index: {}]   ;;  %s1510_s1 = inlined_call_operand.vmem [shape: f32[2,1], index: 1, kind: input, shape index: {}]   ;;  %s1511_s2 = inlined_call_operand.vmem [shape: f32[4,1], index: 2, kind: input, shape index: {}]   ;;  %s1512_s3 = inlined_call_operand.hbm [shape: bf16[2,4,4,256], index: 3, kind: input, shape index: {}]   ;;  %s1513_s4 = inlined_call_operand.vmem [shape: bf16[2,4,256], index: 4, kind: input, shape index: {}]   ;;  %s1514_s5 = inlined_call_operand.vmem [shape: bf16[2,4,256], index: 5, kind: input, shape index: {}]   ;;  %s1515_s6 = inlined_call_operand.vmem [shape: bf16[2,1,256], index: 6, kind: input, shape index: {}]   ;;  %s1516_s7 = inlined_call_operand.hbm [shape: f32[2,2,256], index: 7, kind: output, shape index: {}]  }
   0x1   :  { %14 = vsyncpa [#allocation3 + $0x1], 0 }
   0x2   :  { %15 = vsyncpa [#allocation4], 0 }
   0x3   :  { %17 = vsyncpa [#allocation4 + $0x1], 0  ;;  %s1237_s24 = smov 0   ;;  %s1239_s25 = smov 0  }
   0x4   :  { %s1241_s26 = smov 0   ;;  %s1243_s27 = smov 0  }
   0x5   :  { %s1245_s28 = smov 0   ;;  %s1247_s29 = smov 0  }
   0x6 LB: > { %s967_s30 = sadd.s32 4294967295, %s1188_s29   ;;  %s968_s8 = sadd.s32 4294967294, %s1188_s29   ;;  %s1188_s29 = sphi %s1247_s29, %s23_s29   ;;  %s1184_s28 = sphi %s1245_s28, %s1531_s28   ;;  %s1180_s27 = sphi %s1243_s27, %s1530_s27   ;;  %s1176_s26 = sphi %s1241_s26, %s1529_s26   ;;  %s1172_s25 = sphi %s1239_s25, %s1528_s25   ;;  %s1168_s24 = sphi %s1237_s24, %s1527_s24  }
   0x7   : > { %s35_s9 = sadd.s32 1, %s1184_s28  ;;  %s114_s10 = sadd.s32 1, %s1176_s26 }
   0x8   : > { %p37_p0 = scmp.ge.s32.totalorder %s35_s9, 2  ;;  %p121_p1 = scmp.ne.s32.totalorder %s1176_s26, %s1172_s25 }
   0x9   : > { %p122_p2 = scmp.eq.s32.totalorder %s1188_s29, 0  ;;  %p127_p3 = scmp.ne.s32.totalorder %s1172_s25, %s1168_s24 }
   0xa   : > { %s1533_s9 = smov (%p37_p0, %s35_s9), 0  ;;  %p128_p5 = scmp.eq.s32.totalorder %s967_s30, 0 }
   0xb   : > { %p1278_p4 = por %p122_p2, %p121_p1  ;;  %s109_s12 = ssub.s32 %s1184_s28, %s1533_s9 }
   0xc   : > { %p237_p6 = scmp.eq.s32.totalorder %s967_s30, 1  ;;  %p112_p7 = scmp.eq.s32.totalorder %s109_s12, 0 }
   0xd   : > { %p1284_p8 = por %p128_p5, %p127_p3  ;;  %p243_p10 = scmp.eq.s32.totalorder %s968_s8, 1 }
   0xe   : > { %p1288_p9 = por %p237_p6, %p121_p1  ;;  %p1016_p13 = scmp.lt.s32.totalorder %s1188_s29, 2 }
   0xf   : > { %s1293_s15 = scalar_select %p112_p7, %s1176_s26, %s114_s10  }
  0x10   : > { %s1520_s14 = scalar_select %p1288_p9, 1, 0 }
  0x11   : > { %p1295_p11 = por %p243_p10, %p127_p3  ;;  %s282_s17 = sand.u32 1, %s1176_s26  }
  0x12   : > { %s971_s18 = sshll.u32 %s282_s17, 4  ;;  %s990_s19 = sshll.u32 %s1184_s28, 8 }
  0x13   : > { %s1521_s16 = scalar_select %p1295_p11, 1, 0 }
  0x14   : > { %s1306_s22 = scalar_lea.hbm %s1512_s3, %s990_s19  ;;  %s286_s23 = scalar_lea.vmem [#allocation2], %s971_s18 }
  0x15   : > { %s295_s30 = sshll.u32 %s286_s23, 4  ;;  %p1312_p0 = pnand %p1016_p13, %p1278_p4  ;;  %s1308_s30 = int_to_ptr.vmem [resolvable:$true] %s295_s30 }
  0x16   : > { %s1317_s10 = scalar_lea.sflag [#allocation3], %s282_s17  ;;  %s1076_s12 = scalar_lea.hbm %s1306_s22, 256 }
  0x17   : > { %p1077_p2 = scmp.ne.s32.totalorder %s1306_s22, %s1076_s12  ;;  %p1078_p3 = pneg %p1312_p0 }
  0x18   : > { %s1081_s11 = scalar_lea.hbm %s1512_s3, 512  ;;  %p1082_p4 = scmp.lt.u32.totalorder %s1306_s22, %s1512_s3 }
  0x19   : > { %p1079_p5 = pnand %p1078_p3, %p1077_p2  ;;  %p1083_p7 = scmp.lt.u32.totalorder %s1081_s11, %s1076_s12 }
  0x1a   : > { %p1085_p13 = scmp.lt.u32.totalorder %s1076_s12, %s1306_s22 }
  0x1b   : > { %p1080_p6 = pneg %p1079_p5  ;;  %p1084_p10 = por %p1083_p7, %p1082_p4 }
  0x1d   : > { %p1086_p12 = por %p1085_p13, %p1084_p10 }
  0x1f   : > { %p1087_p1 = pnand %p1086_p12, %p1080_p6 }
  0x21   : > { %1090 = shalt.err (!%p1087_p1)
}
  0x22   : > { %s1091_s17 = scalar_lea.vmem %s1308_s30, 256  ;;  %s1190_s23 = smov [#allocation2]  }
  0x23   : > { %p1092_p2 = scmp.ne.s32.totalorder %s1308_s30, %s1091_s17  ;;  %s1096_s18 = sshll.u32 %s1190_s23, 4  ;;  %s1097_s18 = int_to_ptr.vmem [resolvable:$false] %s1096_s18 }
  0x24   : > { %s1098_s19 = scalar_lea.vmem %s1097_s18, 512  ;;  %p1099_p9 = scmp.lt.s32.totalorder %s1308_s30, %s1097_s18 }
  0x25   : > { %p1094_p5 = pnand %p1092_p2, %p1078_p3  ;;  %p1100_p4 = scmp.lt.s32.totalorder %s1098_s19, %s1091_s17 }
  0x27   : > { %p1095_p11 = pneg %p1094_p5  ;;  %p1101_p7 = por %p1100_p4, %p1099_p9 }
  0x29   : > { %p1102_p10 = pnand %p1101_p7, %p1095_p11 }
  0x2b   : > { %1105 = shalt.err (!%p1102_p10)
}
  0x2c   : > { %s1191_s12 = smov 64   ;;  %s1192_s11 = smov 4  }
  0x2d   : > { %1011 = dma.hbm_to_vmem [thread:$0]  (!%p1312_p0), %s1306_s22, 256, %s1308_s30, %s1317_s10, %s1191_s12, %s1191_s12, %s1192_s11  }
  0x2e   : > { %p341_p12 = scmp.lt.s32.totalorder %s1188_s29, 3  ;;  %p1523_p1 = scmp.ge.s32.totalorder %s1188_s29, 1 }
  0x30   : > { %p342_p3 = pnand %p1523_p1, %p341_p12 }
  0x31   : > { %s1349_s20 = sand.u32 (!%p342_p3), 1, %s1172_s25  }
  0x32   : > { %345 = sbr.rel (%p342_p3) target bundleno = 276 (0x114), region = 48  ;;  %s975_s21 = sshll.u32 (!%p342_p3), %s1349_s20, 4 }
  0x33   : > { %s348_s17 = scalar_lea.sflag (!%p342_p3), [#allocation3], %s1349_s20  ;;  %s1353_s23 = scalar_lea.vmem (!%p342_p3), [#allocation2], %s975_s21 }
  0x39   : > { %1159 = dma.done.wait (%p1284_p8), %s348_s17, 256  }
  0x3a   : > { %1161 = vsyncadd (%p1284_p8), %s348_s17, 4294967040  ;;  %v1193_v0 = vmov 0   ;;  %v459_v1 = vld [vmem:[%s1510_s1] sm:$0x3]  ;;  %p418_p9 = scmp.lt.s32.totalorder %s1180_s27, 1  ;;  %v467_v6 = vlaneseq  ;;  %v1003_v38 = vld [vmem:[%s1353_s23 + $0x8] sm:$0xff]  }
  0x3b   : > { %1071 = vset.pattern.permute.xlu0 %v1193_v0  ;;  %v473_v2 = vld [vmem:[%s1511_s2] sm:$0xf]  ;;  %v1194_v4 = vmov 269488144   ;;  %v1195_v9 = vmov 1966171168   ;;  %v1001_v46 = vunpack.c.l.bf16 %v1003_v38  ;;  %v1002_v47 = vunpack.c.h.bf16 %v1003_v38 }
  0x3c   : > { %462 = vperm.xlu0 %1071, %v459_v1   ;;  %v474_v3 = vsub.f32 0.0, %v473_v2  ;;  %v465_v5 = vunpack.c.l.s4 %v1194_v4  ;;  %s1367_s13 = scalar_select %p418_p9, %s1180_s27, 1  ;;  %v1370_v8 = vshrl.u32 %v467_v6, 7  ;;  %v539_v10 = vunpack.c.l.s4 %v1195_v9  ;;  %v996_v37 = vld [vmem:[%s1353_s23] sm:$0xff]  }
  0x3d   : > { %v997_v43 = vunpack.c.l.bf16 %v996_v37  ;;  %v998_v44 = vunpack.c.h.bf16 %v996_v37  ;;  %v616_v0 = vcombine.high %v1001_v46, %v1001_v46  ;;  %v617_v1 = vcombine.high %v1002_v47, %v1002_v47  ;;  %p1524_p11 = scmp.ne.s32.totalorder %s1520_s14, 0 }
  0x3e   : > { %v466_v7 = vunpack.c.0.s8 %v465_v5  ;;  %s1373_s18 = sshll.u32 %s1367_s13, 2  ;;  %v540_v12 = vunpack.c.0.s8 %v539_v10  ;;  %v483_v17 = vsub.s32 1, %v1370_v8  ;;  %v487_v18 = vsub.s32 3, %v1370_v8  ;;  %s983_s23 = sshll.u32 %s1367_s13, 1 }
  0x3f   : > { %s436_s11 = scalar_lea.vmem %s1513_s4, %s1373_s18  ;;  %s425_s22 = scalar_lea.vmem %s1509_s0, %s1373_s18  ;;  %v1395_v33 = vsub.s32 0, %v1370_v8  ;;  %v511_v36 = vsub.s32 2, %v1370_v8  ;;  %v614_v61 = vcombine.high %v997_v43, %v997_v43  ;;  %v615_v63 = vcombine.high %v998_v44, %v998_v44 }
  0x40   : > { %477 = vperm.xlu0 %1071, %v474_v3   ;;  %v469_v11 = vsub.s32 %v466_v7, %v1370_v8  ;;  %v527_v13 = vld [vmem:[%s436_s11] sm:$0xf]  ;;  %v1387_v20 = vsub.s32 %v540_v12, %v1370_v8  ;;  %s446_s10 = scalar_lea.vmem %s1514_s5, %s1373_s18  ;;  %vm674_vm0 = vcmask 1043456   ;;  %s455_s12 = scalar_lea.vmem %s1515_s6, %s983_s23  ;;  %vm774_vm5 = vcmp.lt.s32.totalorder %v467_v6, 256 }
  0x41   : > { %v458_v15 = vld [vmem:[%s425_s22] sm:$0xf]  ;;  %v528_v19 = vunpack.c.l.bf16 %v527_v13  ;;  %s976_s13 = sshll.u32 %s1349_s20, 2  ;;  %s994_s11 = sshll.u32 %s1180_s27, 6 }
  0x42   : > { %v525_v45 = vld [vmem:[%s446_s10] sm:$0xf]  ;;  %s416_s21 = scalar_lea.vmem [#allocation5], %s976_s13  ;;  %s1460_s8 = scalar_lea.hbm %s1516_s7, %s994_s11 }
  0x43   : > { %v544_v24 = vrot.slane %v528_v19, %v1387_v20  ;;  %v526_v60 = vunpack.c.l.bf16 %v525_v45  ;;  %s814_s17 = sshll.u32 %s416_s21, 4  ;;  %s798_s27 = scalar_lea.sflag [#allocation4], %s1349_s20  ;;  %s1462_s17 = int_to_ptr.vmem [resolvable:$true] %s814_s17 }
  0x44   : > { %s1106_s10 = scalar_lea.vmem %s1462_s17, 64  ;;  %s1196_s23 = smov [#allocation5]  }
  0x45   : > { %v545_v30 = vcombine.high %v544_v24, %v544_v24  ;;  %v552_v34 = vrot.slane %v544_v24, %v1387_v20  ;;  %p1107_p8 = scmp.ne.s32.totalorder %s1462_s17, %s1106_s10  ;;  %s1110_s18 = sshll.u32 %s1196_s23, 4  ;;  %s1111_s18 = int_to_ptr.vmem [resolvable:$false] %s1110_s18 }
  0x46   : > { %s1112_s19 = scalar_lea.vmem %s1111_s18, 128  ;;  %p1113_p13 = scmp.lt.s32.totalorder %s1462_s17, %s1111_s18 }
  0x47   : > { %v559_v35 = vrot.slane %v545_v30, %v1387_v20  ;;  %v560_v39 = vcombine.high %v552_v34, %v552_v34  ;;  %v565_v48 = vrot.slane %v552_v34, %v1395_v33  ;;  %v569_v49 = vrot.slane %v552_v34, %v483_v17  ;;  %p1108_p0 = pnand %p1107_p8, %p1524_p11  ;;  %p1114_p2 = scmp.lt.s32.totalorder %s1112_s19, %s1106_s10 }
  0x49   : > { %v561_v40 = vcombine.high %v559_v35, %v559_v35  ;;  %v573_v50 = vrot.slane %v559_v35, %v1395_v33  ;;  %v581_v51 = vrot.slane %v560_v39, %v1395_v33  ;;  %v577_v55 = vrot.slane %v559_v35, %v483_v17  ;;  %p1109_p6 = pneg %p1108_p0  ;;  %p1115_p5 = por %p1114_p2, %p1113_p13 }
  0x4a   : > { %v585_v56 = vrot.slane %v560_v39, %v483_v17 }
  0x4b   : > { %v589_v52 = vrot.slane %v561_v40, %v1395_v33  ;;  %v593_v57 = vrot.slane %v561_v40, %v483_v17  ;;  %p1116_p4 = pnand %p1115_p5, %p1109_p6 }
  0x4c   : > { %v652_v24 = vcombine.low %v581_v51, %v585_v56 }
  0xbb   : > { %v463_v14 = vpop.permute.xlu0 %462 }
  0xbc   : > { %v470_v16 = vrot.slane %v463_v14, %v469_v11 }
  0xbe   : > { %v472_v21 = vmul.f32 %v470_v16, %v458_v15 }
  0xbf   : > { %v1390_v27 = vpop.permute.xlu0 %477 }
  0xc0   : > { %v484_v22 = vrot.slane %v472_v21, %v483_v17  ;;  %v488_v23 = vrot.slane %v472_v21, %v487_v18  ;;  %v508_v41 = vrot.slane %v472_v21, %v1395_v33  ;;  %v512_v42 = vrot.slane %v472_v21, %v511_v36 }
  0xc2   : > { %v494_v25 = vrot.slane %v484_v22, %v483_v17  ;;  %v498_v26 = vrot.slane %v488_v23, %v483_v17  ;;  %v1414_v53 = vrot.slane %v508_v41, %v1395_v33  ;;  %v522_v58 = vrot.slane %v512_v42, %v1395_v33 }
  0xc3   : > { %v650_v22 = vcombine.low %v565_v48, %v569_v49  ;;  %v651_v23 = vcombine.low %v573_v50, %v577_v55 }
  0xc4   : > { %v499_v28 = vmul.f32 %v494_v25, %v1390_v27  ;;  %v500_v29 = vmul.f32 %v498_v26, %v1390_v27  ;;  %v653_v25 = vcombine.low %v589_v52, %v593_v57 }
  0xc6   : > { %v501_v31 = vmul.f32 1.442695, %v499_v28  ;;  %v503_v32 = vmul.f32 1.442695, %v500_v29 }
  0xc8   : > { %1072 = vpow2.f32 %v501_v31 }
  0xc9   : > { %1074 = vpow2.f32 %v503_v32 }
  0xd2   : > { %v1416_v54 = vpop.eup %1072 }
  0xd3   : > { %v1419_v59 = vpop.eup %1074  ;;  %v523_v62 = vmul.f32 %v1416_v54, %v1414_v53 }
  0xd4   : > { %v524_v2 = vmul.f32 %v1419_v59, %v522_v58 }
  0xd5   : > { %v602_v3 = vmul.f32 %v565_v48, %v523_v62  ;;  %v604_v4 = vmul.f32 %v573_v50, %v523_v62  ;;  %v606_v5 = vmul.f32 %v581_v51, %v523_v62  ;;  %v608_v7 = vmul.f32 %v589_v52, %v523_v62 }
  0xd6   : > { %v603_v9 = vmul.f32 %v569_v49, %v524_v2  ;;  %v605_v10 = vmul.f32 %v577_v55, %v524_v2  ;;  %v607_v11 = vmul.f32 %v585_v56, %v524_v2  ;;  %v609_v12 = vmul.f32 %v593_v57, %v524_v2 }
  0xd7   : > { %v622_v13 = vsub.f32 %v602_v3, %v997_v43  ;;  %v624_v14 = vsub.f32 %v604_v4, %v998_v44  ;;  %v626_v15 = vsub.f32 %v606_v5, %v1001_v46  ;;  %v628_v16 = vsub.f32 %v608_v7, %v1002_v47 }
  0xd8   : > { %v623_v17 = vsub.f32 %v603_v9, %v614_v61  ;;  %v625_v18 = vsub.f32 %v605_v10, %v615_v63  ;;  %v627_v19 = vsub.f32 %v607_v11, %v616_v0  ;;  %v629_v21 = vsub.f32 %v609_v12, %v617_v1 }
  0xd9   : > { %v722_v62 = vmul.f32 %v1414_v53, %v1390_v27  ;;  %v723_v0 = vmul.f32 %v522_v58, %v1390_v27  ;;  %v689_v27 = vld [vmem:[%s455_s12] sm:$0x3] }
  0xda   : > { %v638_v26 = vcombine.low %v622_v13, %v623_v17  ;;  %v639_v28 = vcombine.low %v624_v14, %v625_v18  ;;  %v640_v29 = vcombine.low %v626_v15, %v627_v19  ;;  %v641_v30 = vcombine.low %v628_v16, %v629_v21 }
  0xdb   : > { %v690_v17 = vunpack.c.l.bf16 %v689_v27 }
  0xdc   : > { %v646_v31 = vmul.f32 %v638_v26, %v526_v60  ;;  %v647_v32 = vmul.f32 %v639_v28, %v526_v60  ;;  %v648_v34 = vmul.f32 %v640_v29, %v526_v60  ;;  %v649_v35 = vmul.f32 %v641_v30, %v526_v60 }
  0xdd   : > { %v715_v29 = vrot.slane %v690_v17, %v511_v36 }
  0xde   : > { %v658_v37 = vmul.f32 %v650_v22, %v646_v31  ;;  %v659_v38 = vmul.f32 %v651_v23, %v647_v32  ;;  %v660_v39 = vmul.f32 %v652_v24, %v648_v34  ;;  %v661_v40 = vmul.f32 %v653_v25, %v649_v35 }
  0xe0   : > { %v666_v41 = vcombine.high %v658_v37, %v658_v37  ;;  %v667_v42 = vcombine.high %v659_v38, %v659_v38  ;;  %v668_v43 = vcombine.high %v660_v39, %v660_v39  ;;  %v675_v44 = vsel %vm674_vm0, %v658_v37, 0.0 }
  0xe1   : > { %v676_v45 = vsel %vm674_vm0, %v659_v38, 0.0  ;;  %v669_v46 = vcombine.high %v661_v40, %v661_v40  ;;  %v678_v50 = vsel %vm674_vm0, %v660_v39, 0.0  ;;  %v680_v56 = vsel %vm674_vm0, %v661_v40, 0.0 }
  0xe2   : > { %v677_v47 = vadd.f32 %v676_v45, %v675_v44  ;;  %v682_v48 = vsel %vm674_vm0, %v666_v41, 0.0  ;;  %v683_v49 = vsel %vm674_vm0, %v667_v42, 0.0  ;;  %v685_v55 = vsel %vm674_vm0, %v668_v43, 0.0 }
  0xe3   : > { %v684_v51 = vadd.f32 %v683_v49, %v682_v48  ;;  %v687_v61 = vsel %vm674_vm0, %v669_v46, 0.0 }
  0xe4   : > { %v679_v52 = vadd.f32 %v678_v50, %v677_v47 }
  0xe5   : > { %v686_v57 = vadd.f32 %v685_v55, %v684_v51 }
  0xe6   : > { %v681_v60 = vadd.f32 %v680_v56, %v679_v52 }
  0xe7   : > { %v688_v63 = vadd.f32 %v687_v61, %v686_v57 }
  0xe8   : > { %v691_v1 = vmul.f32 %v1416_v54, %v681_v60  ;;  %v724_v2 = vmul.f32 %v722_v62, %v681_v60 }
  0xe9   : > { %v692_v3 = vmul.f32 %v1419_v59, %v688_v63  ;;  %v725_v4 = vmul.f32 %v723_v0, %v688_v63 }
  0xea   : > { %v693_v5 = vsel %vm674_vm0, %v691_v1, 0.0  ;;  %v726_v7 = vmul.f32 %v1416_v54, %v724_v2 }
  0xeb   : > { %v694_v9 = vrot.slane %v693_v5, 4  ;;  %v700_v53 = vsel %vm674_vm0, %v692_v3, 0.0  ;;  %v727_v10 = vmul.f32 %v1419_v59, %v725_v4  ;;  %v711_v59 = vrot.slane %v690_v17, %v1395_v33 }
  0xec   : > { %v701_v58 = vrot.slane %v700_v53, 4  ;;  %v728_v11 = vsel %vm674_vm0, %v726_v7, 0.0 }
  0xed   : > { %v695_v12 = vadd.f32 %v694_v9, %v693_v5  ;;  %v729_v13 = vrot.slane %v728_v11, 4  ;;  %v735_v14 = vsel %vm674_vm0, %v727_v10, 0.0 }
  0xee   : > { %v702_v15 = vadd.f32 %v701_v58, %v700_v53  ;;  %v736_v16 = vrot.slane %v735_v14, 4 }
  0xef   : > { %v696_v18 = vrot.slane %v695_v12, 2  ;;  %v730_v19 = vadd.f32 %v729_v13, %v728_v11 }
  0xf0   : > { %v703_v21 = vrot.slane %v702_v15, 2  ;;  %v737_v54 = vadd.f32 %v736_v16, %v735_v14 }
  0xf1   : > { %v697_v22 = vadd.f32 %v696_v18, %v695_v12  ;;  %v731_v23 = vrot.slane %v730_v19, 2 }
  0xf2   : > { %v704_v24 = vadd.f32 %v703_v21, %v702_v15  ;;  %v738_v25 = vrot.slane %v737_v54, 2 }
  0xf3   : > { %v698_v26 = vrot.slane %v697_v22, 1  ;;  %v732_v28 = vadd.f32 %v731_v23, %v730_v19 }
  0xf4   : > { %v705_v30 = vrot.slane %v704_v24, 1  ;;  %v739_v31 = vadd.f32 %v738_v25, %v737_v54 }
  0xf5   : > { %v699_v32 = vadd.f32 %v698_v26, %v697_v22  ;;  %v733_v34 = vrot.slane %v732_v28, 1 }
  0xf6   : > { %v706_v35 = vadd.f32 %v705_v30, %v704_v24  ;;  %v740_v37 = vrot.slane %v739_v31, 1 }
  0xf7   : > { %v718_v38 = vmul.f32 %v711_v59, %v699_v32  ;;  %v734_v39 = vadd.f32 %v733_v34, %v732_v28 }
  0xf8   : > { %v719_v40 = vmul.f32 %v715_v29, %v706_v35  ;;  %v741_v41 = vadd.f32 %v740_v37, %v739_v31 }
  0xf9   : > { %v720_v42 = vmul.f32 0.01, %v718_v38  ;;  %v742_v43 = vmul.f32 %v734_v39, %v711_v59 }
  0xfa   : > { %v721_v44 = vmul.f32 0.01, %v719_v40  ;;  %v743_v33 = vmul.f32 %v741_v41, %v715_v29 }
  0xfb   : > { %v744_v45 = vmul.f32 0.01, %v742_v43  ;;  %vm746_vm1 = vcmp.ne.f32.partialorder %v720_v42, %v720_v42 }
  0xfc   : > { %v745_v8 = vmul.f32 0.01, %v743_v33  ;;  %vm747_vm2 = vcmp.ne.f32.partialorder %v721_v44, %v721_v44  ;;  %v748_v36 = vsel %vm746_vm1, 0.0, %v720_v42 }
  0xfd   : > { %v749_v46 = vsel %vm747_vm2, 0.0, %v721_v44  ;;  %vm750_vm3 = vcmp.ne.f32.partialorder %v744_v45, %v744_v45 }
  0xfe   : > { %vm751_vm4 = vcmp.ne.f32.partialorder %v745_v8, %v745_v8  ;;  %v756_v47 = vcombine.low %v748_v36, %v749_v46  ;;  %v752_v48 = vsel %vm750_vm3, 0.0, %v744_v45 }
  0xff   : > { %v753_v49 = vsel %vm751_vm4, 0.0, %v745_v8 }
 0x100   : > { %v779_v50 = vcombine.low %v752_v48, %v753_v49  ;;  %v763_v51 = vrot.slane %v756_v47, %v1387_v20 }
 0x102   : > { %v770_v52 = vrot.slane %v763_v51, %v1387_v20  ;;  %v786_v55 = vrot.slane %v779_v50, %v1387_v20 }
 0x104   : > { %776 = vst.msk [vmem:[%s416_s21] ss:$2 sm:$0x3] %vm774_vm5, %v770_v52  ;;  %v793_v56 = vrot.slane %v786_v55, %v1387_v20 }
 0x106   : > { %984 = vst.msk [vmem:[%s416_s21 + $0x1] ss:$2 sm:$0x3] %vm774_vm5, %v793_v56 }
 0x107   : > { %1119 = shalt.err (!%p1116_p4)
}
 0x108   : > { %s1120_s20 = scalar_lea.hbm %s1460_s8, 64  ;;  %s1124_s11 = scalar_lea.hbm %s1516_s7, 128 }
 0x109   : > { %p1121_p7 = scmp.ne.s32.totalorder %s1460_s8, %s1120_s20  ;;  %p1125_p1 = scmp.lt.u32.totalorder %s1460_s8, %s1516_s7 }
 0x10a   : > { %p1126_p3 = scmp.lt.u32.totalorder %s1124_s11, %s1120_s20  ;;  %p1128_p8 = scmp.lt.u32.totalorder %s1120_s20, %s1460_s8 }
 0x10b   : > { %p1122_p10 = pnand %p1121_p7, %p1524_p11 }
 0x10c   : > { %p1127_p9 = por %p1126_p3, %p1125_p1 }
 0x10d   : > { %p1123_p12 = pneg %p1122_p10 }
 0x10e   : > { %p1129_p0 = por %p1128_p8, %p1127_p9 }
 0x110   : > { %p1130_p6 = pnand %p1129_p0, %p1123_p12 }
 0x112   : > { %1133 = shalt.err (!%p1130_p6)
}
 0x113   : > { %1006 = dma.vmem_to_hbm [thread:$0]  (%p1524_p11), %s1462_s17, 64, %s1460_s8, %s798_s27  }
 0x114 PF: > { %s826_s30 = sand.u32 1, %s1168_s24   ;;  %p1525_p13 = scmp.ne.s32.totalorder %s1521_s16, 0 }
 0x115   : > { %p1526_p2 = scmp.ge.s32.totalorder %s1188_s29, 2  ;;  %s827_s10 = scalar_lea.sflag [#allocation4], %s826_s30 }
 0x117   : > { %p1013_p5 = pnand %p1526_p2, %p1525_p13 }
 0x119   : > { %1163 = dma.done.wait (!%p1013_p5), %s827_s10, 64  }
 0x11a   : > { %1165 = vsyncadd (!%p1013_p5), %s827_s10, 4294967232  ;;  %s23_s29 = sadd.s32 1, %s1188_s29   ;;  %s1527_s24 = smov %s1172_s25 }
 0x11b   : > { %p20_p4 = scmp.ge.s32.totalorder %s23_s29, 4   ;;  %s1528_s25 = smov %s1176_s26 }
 0x11c   : > { %s1529_s26 = smov %s1293_s15  ;;  %s1530_s27 = smov %s1184_s28 }
 0x11d   : > { %s1531_s28 = smov %s1533_s9  ;;  %22 = sbr.rel (!%p20_p4) target bundleno = 6 (0x6), region = 106 }
 0x124   :  { %832 = vsyncpa [#allocation3], 1 }
 0x125   :  { %834 = vsyncpa [#allocation3 + $0x1], 1 }
 0x126   :  { %835 = vsyncpa [#allocation4], 1 }
 0x127   :  { %837 = vsyncpa [#allocation4 + $0x1], 1 }

</bundles_post_ra>
